<compile_context>
chip_gen: v7x
topology: tpu7x:2x2x1
jax: 0.10.0
libtpu: 0.0.40
codegen_flags: <defaults>
</compile_context>

<pallas_src>
import jax
import jax.numpy as jnp
from jax.experimental import pallas as pl
from jax.experimental.pallas import tpu as pltpu

_LANE = 128
_SUBLANE = 8


def _round_up(n, m):
    return ((n + m - 1) // m) * m


def gated_equivariant_kernel(
    x_ref,    # [TN, Hp]       scalar features tile
    v_ref,    # [TN, 3*Hp]     vector features tile (3 components concatenated on lanes)
    w12_ref,  # [Hp, Hp+Op]    fused vec1_proj | vec2_proj weights (in, out)
    wu1_ref,  # [2*Hp, Ip]     update_net[0] weight (x rows | vec1 rows)
    bu1_ref,  # [1, Ip]        update_net[0] bias (f32)
    wu2_ref,  # [Ip, 2*Op]     update_net[2] weight (x cols | gate cols)
    bu2_ref,  # [1, 2*Op]      update_net[2] bias (f32)
    xo_ref,   # [TN, Op]       scalar output tile
    vo_ref,   # [TN, 3*Op]     vector output tile (3 components concatenated on lanes)
):
    hp = x_ref.shape[1]
    op = xo_ref.shape[1]

    # --- fused vec1_proj / vec2_proj: one wide matmul per Cartesian component.
    # NOTE: the PyTorch mask on all-zero rows only protects *gradients*; the
    # forward value is identical (norm of a zero vector is zero).
    # TODO(synk): if the bundle dump shows 3 redundant RHS pushes for w12, keep it
    # resident across the component loop via pltpu.matmul_push_rhs/matmul_acc_lhs.
    w12 = w12_ref[...]
    acc = None
    for c in range(3):                                       # static unroll
        vc = v_ref[:, c * hp:(c + 1) * hp]                   # lane-aligned slice
        vb = jnp.dot(vc, w12, preferred_element_type=jnp.float32)   # [TN, Hp+Op]
        # Stash vec2_c straight into the output buffer: no long live ranges/spills.
        vo_ref[:, c * op:(c + 1) * op] = vb[:, hp:].astype(vo_ref.dtype)
        vb1 = vb[:, :hp]                                     # vec1_proj part (f32)
        sq = vb1 * vb1
        acc = sq if acc is None else acc + sq
    vec1 = jnp.sqrt(acc)                                     # [TN, Hp] f32 (EUP)

    # --- update_net[0]: one K=2*Hp matmul on cat([x, vec1]) built lane-aligned in VMEM.
    h_in = jnp.concatenate([x_ref[...], vec1.astype(x_ref.dtype)], axis=-1)  # [TN, 2*Hp]
    h = jnp.dot(h_in, wu1_ref[...], preferred_element_type=jnp.float32) + bu1_ref[...]
    h = h * jax.nn.sigmoid(h)                                # SiLU in f32 (EUP sigmoid)

    # --- update_net[2]: one full-width [Ip, 2*Op] matmul; lane-aligned split afterwards.
    u = jnp.dot(h.astype(wu2_ref.dtype), wu2_ref[...],
                preferred_element_type=jnp.float32) + bu2_ref[...]

    # scalar_activation=False in the default module config -> no extra act on x.
    xo_ref[...] = u[:, :op].astype(xo_ref.dtype)
    gate = u[:, op:].astype(vo_ref.dtype)

    # --- v_out[:, c, :] = gate * vec2_c : in-place on the already-written output slabs.
    for c in range(3):
        sl = slice(c * op, (c + 1) * op)
        vo_ref[:, sl] = vo_ref[:, sl] * gate


def prepare_params(params, *, dtype=jnp.bfloat16):
    """One-time repacking of module weights for the kernel (hoisted out of the call path).

    params holds [in, out] weights: w1 [H,H], w2 [H,O], wu1 [2H,I], bu1 [1,I],
    wu2 [I,2O], bu2 [1,2O].
    """
    H = params["w1"].shape[0]
    O = params["w2"].shape[1]
    I = params["wu1"].shape[1]
    Hp, Op, Ip = _round_up(H, _LANE), _round_up(O, _LANE), _round_up(I, _LANE)

    def pad2(w, rows, cols, dt):
        w = jnp.asarray(w, dt)
        if w.shape == (rows, cols):
            return w
        return jnp.zeros((rows, cols), dt).at[:w.shape[0], :w.shape[1]].set(w)

    # Fuse vec1_proj | vec2_proj into one [Hp, Hp+Op] RHS.
    w12 = jnp.concatenate([pad2(params["w1"], Hp, Hp, dtype),
                           pad2(params["w2"], Hp, Op, dtype)], axis=1)
    # update_net[0]: keep the x-rows / vec1-rows padding separate, then stack -> [2*Hp, Ip].
    wu1 = params["wu1"]
    wu1p = jnp.concatenate([pad2(wu1[:H, :], Hp, Ip, dtype),
                            pad2(wu1[H:, :], Hp, Ip, dtype)], axis=0)
    bu1 = pad2(params["bu1"], 1, Ip, jnp.float32)
    # update_net[2]: x-output cols | gate cols, each padded to Op, re-fused -> [Ip, 2*Op].
    wu2 = params["wu2"]
    wu2p = jnp.concatenate([pad2(wu2[:, :O], Ip, Op, dtype),
                            pad2(wu2[:, O:], Ip, Op, dtype)], axis=1)
    bu2 = params["bu2"]
    bu2p = jnp.concatenate([pad2(bu2[:, :O], 1, Op, jnp.float32),
                            pad2(bu2[:, O:], 1, Op, jnp.float32)], axis=1)

    return dict(w12=w12, wu1=wu1p, bu1=bu1, wu2=wu2p, bu2=bu2p,
                H=H, O=O, I=I, Hp=Hp, Op=Op, Ip=Ip, dtype=dtype)


def gated_equivariant_block(x, v, prepared, *, block_n=512):
    """x: [N, H], v: [N, 3, H]. Returns (x_out [N, O], v_out [N, 3, O]) in the compute dtype."""
    N, H = x.shape
    assert v.shape == (N, 3, H) and H == prepared["H"]
    Hp, Op, Ip = prepared["Hp"], prepared["Op"], prepared["Ip"]
    O = prepared["O"]
    dtype = prepared["dtype"]

    # --- streamed activations: cast to bf16; pad feature dims only when needed;
    #     rows are never padded (edge grid block handles N % TN != 0).
    xk = x.astype(dtype)
    vk = v.astype(dtype)
    if Hp != H:
        xk = jnp.zeros((N, Hp), dtype).at[:, :H].set(xk)
        vk = jnp.zeros((N, 3, Hp), dtype).at[:, :, :H].set(vk)
    vk = vk.reshape(N, 3 * Hp)

    # --- row tile: aim for >= 4 grid steps (two per v7x TC), capped at block_n rows.
    TN = min(block_n, max(_SUBLANE, _round_up(pl.cdiv(N, 4), _SUBLANE)))
    TN = min(TN, _round_up(N, _SUBLANE))
    grid = (pl.cdiv(N, TN),)

    row_map = lambda i: (i, 0)
    fixed = lambda i: (0, 0)

    def wspec(shape):
        # Constant index_map -> single-buffer: double-buffering buys nothing and
        # would double resident weight VMEM (relevant on v7x at large H/I/O).
        return pl.BlockSpec(shape, fixed, pipeline_mode=pl.Buffered(1))

    # --- computed VMEM budget (weights single-buffered + 2x activation/output tiles
    #     + f32 intermediates), with headroom, capped well below v7x's 64 MiB/TC.
    weight_bytes = sum(int(prepared[k].size) * prepared[k].dtype.itemsize
                       for k in ("w12", "wu1", "bu1", "wu2", "bu2"))
    bpe = jnp.dtype(dtype).itemsize
    act_tile_bytes = TN * (4 * Hp + 4 * Op) * bpe                 # x, v(3), xo, vo(3)
    f32_scratch = TN * ((Hp + Op) + Hp + 2 * Hp + Ip + 2 * Op) * 4
    needed = weight_bytes + 2 * act_tile_bytes + f32_scratch
    vmem_limit = int(min(max(needed * 3 // 2 + (4 << 20), 16 << 20), 48 << 20))

    flops = 2 * N * (3 * Hp * (Hp + Op) + 2 * Hp * Ip + 2 * Ip * Op)
    bytes_accessed = (bpe * N * (4 * Hp + 4 * Op)) + weight_bytes
    cost = pl.CostEstimate(flops=flops,
                           transcendentals=N * (Ip + Hp),
                           bytes_accessed=bytes_accessed)

    xo, vo = pl.pallas_call(
        gated_equivariant_kernel,
        out_shape=(
            jax.ShapeDtypeStruct((N, Op), dtype),
            jax.ShapeDtypeStruct((N, 3 * Op), dtype),
        ),
        grid=grid,
        in_specs=[
            pl.BlockSpec((TN, Hp), row_map),          # x tile
            pl.BlockSpec((TN, 3 * Hp), row_map),      # v tile
            wspec((Hp, Hp + Op)),                     # fused vec projections
            wspec((2 * Hp, Ip)),                      # update_net[0] weight
            wspec((1, Ip)),                           # update_net[0] bias
            wspec((Ip, 2 * Op)),                      # update_net[2] weight
            wspec((1, 2 * Op)),                       # update_net[2] bias
        ],
        out_specs=(
            pl.BlockSpec((TN, Op), row_map),
            pl.BlockSpec((TN, 3 * Op), row_map),
        ),
        compiler_params=pltpu.CompilerParams(
            dimension_semantics=("parallel",),
            vmem_limit_bytes=vmem_limit,
        ),
        cost_estimate=cost,
    )(xk, vk, prepared["w12"], prepared["wu1"], prepared["bu1"],
      prepared["wu2"], prepared["bu2"])

    x_out = xo[:, :O]
    v_out = vo.reshape(N, 3, Op)[:, :, :O]
    return x_out, v_out


def make_params(key, hidden_channels, out_channels, intermediate_channels=None):
    """Deterministic synthetic parameters; all weights stored as [in, out]."""
    if intermediate_channels is None:
        intermediate_channels = hidden_channels
    H, O, I = hidden_channels, out_channels, intermediate_channels
    k1, k2, k3, k4, k5, k6 = jax.random.split(key, 6)

    def xavier(k, fan_in, fan_out):
        limit = jnp.sqrt(6.0 / (fan_in + fan_out))
        return jax.random.uniform(k, (fan_in, fan_out), jnp.float32, -limit, limit)

    return {
        "w1": xavier(k1, H, H),                       # vec1_proj (no bias)
        "w2": xavier(k2, H, O),                       # vec2_proj (no bias)
        "wu1": xavier(k3, 2 * H, I),                  # update_net[0]
        "bu1": 0.1 * jax.random.normal(k5, (1, I), jnp.float32),
        "wu2": xavier(k4, I, 2 * O),                  # update_net[2]
        "bu2": 0.1 * jax.random.normal(k6, (1, 2 * O), jnp.float32),
    }


def reference(x, v, params):
    """Plain-JAX f32 reference matching the PyTorch forward (scalar_activation=False)."""
    O = params["w2"].shape[1]
    vec1_buffer = jnp.einsum("nch,hk->nck", v, params["w1"])
    vec1 = jnp.sqrt(jnp.sum(vec1_buffer * vec1_buffer, axis=-2))     # norm over dim=-2
    vec2 = jnp.einsum("nch,ho->nco", v, params["w2"])
    xc = jnp.concatenate([x, vec1], axis=-1)
    h = xc @ params["wu1"] + params["bu1"]
    h = h * jax.nn.sigmoid(h)                                        # SiLU
    u = h @ params["wu2"] + params["bu2"]
    x_out, gate = u[:, :O], u[:, O:]
    v_out = gate[:, None, :] * vec2
    return x_out, v_out


def _check(N, H, O, key):
    kx, kv, kp = jax.random.split(key, 3)
    x = jax.random.normal(kx, (N, H), jnp.float32)
    v = jax.random.normal(kv, (N, 3, H), jnp.float32)
    params = make_params(kp, H, O)
    prepared = prepare_params(params)                 # once per module, not per call

    x_out, v_out = gated_equivariant_block(x, v, prepared)
    x_out = jax.block_until_ready(x_out).astype(jnp.float32)
    v_out = jax.block_until_ready(v_out).astype(jnp.float32)

    # Reference on the same bf16-rounded operands (isolates kernel error from dtype cast).
    bf = lambda a: a.astype(jnp.bfloat16).astype(jnp.float32)
    params_bf = dict(params, w1=bf(params["w1"]), w2=bf(params["w2"]),
                     wu1=bf(params["wu1"]), wu2=bf(params["wu2"]))
    x_ref, v_ref = reference(bf(x), bf(v), params_bf)

    assert x_out.shape == (N, O) and v_out.shape == (N, 3, O)
    assert jnp.allclose(x_out, x_ref, atol=5e-2, rtol=5e-2)
    assert jnp.allclose(v_out, v_ref, atol=5e-2, rtol=5e-2)


if __name__ == "__main__":
    key = jax.random.PRNGKey(0)
    k_small, k_big = jax.random.split(key)

    # Small, unaligned module-like sizes (exercises the feature-padding path).
    _check(N=8, H=32, O=16, key=k_small)
    # Lane-aligned sizes (no padding, multi-step grid with TN=128 -> 4 steps).
    _check(N=512, H=128, O=128, key=k_big)

    # TODO(synk): the PyTorch branch that masks gradients (and warns) for atoms whose
    # projected vector features are all-zero has no forward-pass effect and is not
    # represented here; add a custom VJP with the epsilon/mask if differentiated.
    print("KERNEL_OK")
</pallas_src>

<mosaic_0001>
module attributes {stable_mosaic.version = 11 : i64} {
  func.func @gated_equivariant_kernel(%arg0: i32, %arg1: memref<8x128xbf16, #tpu.memory_space<vmem>>, %arg2: memref<8x384xbf16, #tpu.memory_space<vmem>>, %arg3: memref<128x256xbf16, #tpu.memory_space<vmem>>, %arg4: memref<256x128xbf16, #tpu.memory_space<vmem>>, %arg5: memref<1x128xf32, #tpu.memory_space<vmem>>, %arg6: memref<128x256xbf16, #tpu.memory_space<vmem>>, %arg7: memref<1x256xf32, #tpu.memory_space<vmem>>, %arg8: memref<8x128xbf16, #tpu.memory_space<vmem>>, %arg9: memref<8x384xbf16, #tpu.memory_space<vmem>>) attributes {dimension_semantics = [#tpu.dimension_semantics<parallel>], iteration_bounds = array<i64: 1>, scalar_prefetch = 0 : i64, scratch_operands = 0 : i64, tpu.core_type = #tpu.core_type<tc>, window_params = [{transform_indices = @transform_0, window_bounds = array<i64: 8, 128>}, {transform_indices = @transform_1, window_bounds = array<i64: 8, 384>}, {pipeline_mode = #tpu.pipeline_mode<synchronous>, transform_indices = @transform_2, window_bounds = array<i64: 128, 256>}, {pipeline_mode = #tpu.pipeline_mode<synchronous>, transform_indices = @transform_3, window_bounds = array<i64: 256, 128>}, {pipeline_mode = #tpu.pipeline_mode<synchronous>, transform_indices = @transform_4, window_bounds = array<i64: 1, 128>}, {pipeline_mode = #tpu.pipeline_mode<synchronous>, transform_indices = @transform_5, window_bounds = array<i64: 128, 256>}, {pipeline_mode = #tpu.pipeline_mode<synchronous>, transform_indices = @transform_6, window_bounds = array<i64: 1, 256>}, {transform_indices = @transform_7, window_bounds = array<i64: 8, 128>}, {transform_indices = @transform_8, window_bounds = array<i64: 8, 384>}]} {
    %c0 = arith.constant 0 : index
    %c0_0 = arith.constant 0 : index
    %0 = vector.load %arg3[%c0, %c0_0] : memref<128x256xbf16, #tpu.memory_space<vmem>>, vector<128x256xbf16>
    %c0_1 = arith.constant 0 : index
    %c0_2 = arith.constant 0 : index
    %1 = vector.load %arg2[%c0_1, %c0_2] : memref<8x384xbf16, #tpu.memory_space<vmem>>, vector<8x128xbf16>
    %cst = arith.constant dense<0.000000e+00> : vector<8x256xf32>
    %2 = tpu.matmul %1, %0, %cst {dimension_numbers = #tpu.dot_dimension_numbers<[1], [0], [0], [1], [0, 0, 1, 1], [], []>} : vector<8x128xbf16>, vector<128x256xbf16>, vector<8x256xf32> -> vector<8x256xf32>
    %3 = vector.extract_strided_slice %2 {offsets = [0, 128], sizes = [8, 128], strides = [1, 1]} : vector<8x256xf32> to vector<8x128xf32>
    %4 = arith.truncf %3 : vector<8x128xf32> to vector<8x128xbf16>
    %c0_3 = arith.constant 0 : index
    %c0_4 = arith.constant 0 : index
    %5 = vector.load %arg9[%c0_3, %c0_4] : memref<8x384xbf16, #tpu.memory_space<vmem>>, vector<8x128xbf16>
    tpu.vector_store %arg9[%c0_3, %c0_4], %4 {strides = array<i32>} : memref<8x384xbf16, #tpu.memory_space<vmem>>, vector<8x128xbf16>,
    %6 = vector.extract_strided_slice %2 {offsets = [0, 0], sizes = [8, 128], strides = [1, 1]} : vector<8x256xf32> to vector<8x128xf32>
    %7 = arith.mulf %6, %6 : vector<8x128xf32>
    %c0_5 = arith.constant 0 : index
    %c128 = arith.constant 128 : index
    %8 = vector.load %arg2[%c0_5, %c128] : memref<8x384xbf16, #tpu.memory_space<vmem>>, vector<8x128xbf16>
    %cst_6 = arith.constant dense<0.000000e+00> : vector<8x256xf32>
    %9 = tpu.matmul %8, %0, %cst_6 {dimension_numbers = #tpu.dot_dimension_numbers<[1], [0], [0], [1], [0, 0, 1, 1], [], []>} : vector<8x128xbf16>, vector<128x256xbf16>, vector<8x256xf32> -> vector<8x256xf32>
    %10 = vector.extract_strided_slice %9 {offsets = [0, 128], sizes = [8, 128], strides = [1, 1]} : vector<8x256xf32> to vector<8x128xf32>
    %11 = arith.truncf %10 : vector<8x128xf32> to vector<8x128xbf16>
    %c0_7 = arith.constant 0 : index
    %c128_8 = arith.constant 128 : index
    %12 = vector.load %arg9[%c0_7, %c128_8] : memref<8x384xbf16, #tpu.memory_space<vmem>>, vector<8x128xbf16>
    tpu.vector_store %arg9[%c0_7, %c128_8], %11 {strides = array<i32>} : memref<8x384xbf16, #tpu.memory_space<vmem>>, vector<8x128xbf16>,
    %13 = vector.extract_strided_slice %9 {offsets = [0, 0], sizes = [8, 128], strides = [1, 1]} : vector<8x256xf32> to vector<8x128xf32>
    %14 = arith.mulf %13, %13 : vector<8x128xf32>
    %15 = arith.addf %7, %14 : vector<8x128xf32>
    %c0_9 = arith.constant 0 : index
    %c256 = arith.constant 256 : index
    %16 = vector.load %arg2[%c0_9, %c256] : memref<8x384xbf16, #tpu.memory_space<vmem>>, vector<8x128xbf16>
    %cst_10 = arith.constant dense<0.000000e+00> : vector<8x256xf32>
    %17 = tpu.matmul %16, %0, %cst_10 {dimension_numbers = #tpu.dot_dimension_numbers<[1], [0], [0], [1], [0, 0, 1, 1], [], []>} : vector<8x128xbf16>, vector<128x256xbf16>, vector<8x256xf32> -> vector<8x256xf32>
    %18 = vector.extract_strided_slice %17 {offsets = [0, 128], sizes = [8, 128], strides = [1, 1]} : vector<8x256xf32> to vector<8x128xf32>
    %19 = arith.truncf %18 : vector<8x128xf32> to vector<8x128xbf16>
    %c0_11 = arith.constant 0 : index
    %c256_12 = arith.constant 256 : index
    %20 = vector.load %arg9[%c0_11, %c256_12] : memref<8x384xbf16, #tpu.memory_space<vmem>>, vector<8x128xbf16>
    tpu.vector_store %arg9[%c0_11, %c256_12], %19 {strides = array<i32>} : memref<8x384xbf16, #tpu.memory_space<vmem>>, vector<8x128xbf16>,
    %21 = vector.extract_strided_slice %17 {offsets = [0, 0], sizes = [8, 128], strides = [1, 1]} : vector<8x256xf32> to vector<8x128xf32>
    %22 = arith.mulf %21, %21 : vector<8x128xf32>
    %23 = arith.addf %15, %22 : vector<8x128xf32>
    %24 = math.sqrt %23 : vector<8x128xf32>
    %c0_13 = arith.constant 0 : index
    %c0_14 = arith.constant 0 : index
    %25 = vector.load %arg1[%c0_13, %c0_14] : memref<8x128xbf16, #tpu.memory_space<vmem>>, vector<8x128xbf16>
    %26 = arith.truncf %24 : vector<8x128xf32> to vector<8x128xbf16>
    %27 = tpu.concatenate %25, %26 in 1 : vector<8x128xbf16>, vector<8x128xbf16> -> vector<8x256xbf16>
    %c0_15 = arith.constant 0 : index
    %c0_16 = arith.constant 0 : index
    %28 = vector.load %arg4[%c0_15, %c0_16] : memref<256x128xbf16, #tpu.memory_space<vmem>>, vector<256x128xbf16>
    %cst_17 = arith.constant dense<0.000000e+00> : vector<8x128xf32>
    %29 = tpu.matmul %27, %28, %cst_17 {dimension_numbers = #tpu.dot_dimension_numbers<[1], [0], [0], [1], [0, 0, 1, 1], [], []>} : vector<8x256xbf16>, vector<256x128xbf16>, vector<8x128xf32> -> vector<8x128xf32>
    %c0_18 = arith.constant 0 : index
    %c0_19 = arith.constant 0 : index
    %30 = vector.load %arg5[%c0_18, %c0_19] : memref<1x128xf32, #tpu.memory_space<vmem>>, vector<1x128xf32>
    %31 = vector.broadcast %30 : vector<1x128xf32> to vector<8x128xf32>
    %32 = arith.addf %29, %31 : vector<8x128xf32>
    %33 = arith.negf %32 : vector<8x128xf32>
    %34 = math.exp %33 : vector<8x128xf32>
    %cst_20 = arith.constant 1.000000e+00 : f32
    %35 = vector.broadcast %cst_20 : f32 to vector<8x128xf32>
    %36 = arith.addf %35, %34 : vector<8x128xf32>
    %37 = arith.divf %35, %36 : vector<8x128xf32>
    %38 = arith.mulf %32, %37 : vector<8x128xf32>
    %39 = arith.truncf %38 : vector<8x128xf32> to vector<8x128xbf16>
    %c0_21 = arith.constant 0 : index
    %c0_22 = arith.constant 0 : index
    %40 = vector.load %arg6[%c0_21, %c0_22] : memref<128x256xbf16, #tpu.memory_space<vmem>>, vector<128x256xbf16>
    %cst_23 = arith.constant dense<0.000000e+00> : vector<8x256xf32>
    %41 = tpu.matmul %39, %40, %cst_23 {dimension_numbers = #tpu.dot_dimension_numbers<[1], [0], [0], [1], [0, 0, 1, 1], [], []>} : vector<8x128xbf16>, vector<128x256xbf16>, vector<8x256xf32> -> vector<8x256xf32>
    %c0_24 = arith.constant 0 : index
    %c0_25 = arith.constant 0 : index
    %42 = vector.load %arg7[%c0_24, %c0_25] : memref<1x256xf32, #tpu.memory_space<vmem>>, vector<1x256xf32>
    %43 = vector.broadcast %42 : vector<1x256xf32> to vector<8x256xf32>
    %44 = arith.addf %41, %43 : vector<8x256xf32>
    %45 = vector.extract_strided_slice %44 {offsets = [0, 0], sizes = [8, 128], strides = [1, 1]} : vector<8x256xf32> to vector<8x128xf32>
    %46 = arith.truncf %45 : vector<8x128xf32> to vector<8x128xbf16>
    %c0_26 = arith.constant 0 : index
    %c0_27 = arith.constant 0 : index
    %47 = vector.load %arg8[%c0_26, %c0_27] : memref<8x128xbf16, #tpu.memory_space<vmem>>, vector<8x128xbf16>
    tpu.vector_store %arg8[%c0_26, %c0_27], %46 {strides = array<i32>} : memref<8x128xbf16, #tpu.memory_space<vmem>>, vector<8x128xbf16>,
    %48 = vector.extract_strided_slice %44 {offsets = [0, 128], sizes = [8, 128], strides = [1, 1]} : vector<8x256xf32> to vector<8x128xf32>
    %49 = arith.truncf %48 : vector<8x128xf32> to vector<8x128xbf16>
    %c0_28 = arith.constant 0 : index
    %c0_29 = arith.constant 0 : index
    %50 = vector.load %arg9[%c0_28, %c0_29] : memref<8x384xbf16, #tpu.memory_space<vmem>>, vector<8x128xbf16>
    %51 = arith.mulf %50, %49 : vector<8x128xbf16>
    %c0_30 = arith.constant 0 : index
    %c0_31 = arith.constant 0 : index
    %52 = vector.load %arg9[%c0_30, %c0_31] : memref<8x384xbf16, #tpu.memory_space<vmem>>, vector<8x128xbf16>
    tpu.vector_store %arg9[%c0_30, %c0_31], %51 {strides = array<i32>} : memref<8x384xbf16, #tpu.memory_space<vmem>>, vector<8x128xbf16>,
    %c0_32 = arith.constant 0 : index
    %c128_33 = arith.constant 128 : index
    %53 = vector.load %arg9[%c0_32, %c128_33] : memref<8x384xbf16, #tpu.memory_space<vmem>>, vector<8x128xbf16>
    %54 = arith.mulf %53, %49 : vector<8x128xbf16>
    %c0_34 = arith.constant 0 : index
    %c128_35 = arith.constant 128 : index
    %55 = vector.load %arg9[%c0_34, %c128_35] : memref<8x384xbf16, #tpu.memory_space<vmem>>, vector<8x128xbf16>
    tpu.vector_store %arg9[%c0_34, %c128_35], %54 {strides = array<i32>} : memref<8x384xbf16, #tpu.memory_space<vmem>>, vector<8x128xbf16>,
    %c0_36 = arith.constant 0 : index
    %c256_37 = arith.constant 256 : index
    %56 = vector.load %arg9[%c0_36, %c256_37] : memref<8x384xbf16, #tpu.memory_space<vmem>>, vector<8x128xbf16>
    %57 = arith.mulf %56, %49 : vector<8x128xbf16>
    %c0_38 = arith.constant 0 : index
    %c256_39 = arith.constant 256 : index
    %58 = vector.load %arg9[%c0_38, %c256_39] : memref<8x384xbf16, #tpu.memory_space<vmem>>, vector<8x128xbf16>
    tpu.vector_store %arg9[%c0_38, %c256_39], %57 {strides = array<i32>} : memref<8x384xbf16, #tpu.memory_space<vmem>>, vector<8x128xbf16>,
    return
  }
  func.func @transform_0(%arg0: i32) -> (i32, i32) {
    %c0_i32 = arith.constant 0 : i32
    %c0_i32_0 = arith.constant 0 : i32
    return %arg0, %c0_i32 : i32, i32
  }
  func.func @transform_1(%arg0: i32) -> (i32, i32) {
    %c0_i32 = arith.constant 0 : i32
    %c0_i32_0 = arith.constant 0 : i32
    return %arg0, %c0_i32 : i32, i32
  }
  func.func @transform_2(%arg0: i32) -> (i32, i32) {
    %c0_i32 = arith.constant 0 : i32
    %c0_i32_0 = arith.constant 0 : i32
    %c0_i32_1 = arith.constant 0 : i32
    return %c0_i32, %c0_i32_0 : i32, i32
  }
  func.func @transform_3(%arg0: i32) -> (i32, i32) {
    %c0_i32 = arith.constant 0 : i32
    %c0_i32_0 = arith.constant 0 : i32
    %c0_i32_1 = arith.constant 0 : i32
    return %c0_i32, %c0_i32_0 : i32, i32
  }
  func.func @transform_4(%arg0: i32) -> (i32, i32) {
    %c0_i32 = arith.constant 0 : i32
    %c0_i32_0 = arith.constant 0 : i32
    %c0_i32_1 = arith.constant 0 : i32
    return %c0_i32, %c0_i32_0 : i32, i32
  }
  func.func @transform_5(%arg0: i32) -> (i32, i32) {
    %c0_i32 = arith.constant 0 : i32
    %c0_i32_0 = arith.constant 0 : i32
    %c0_i32_1 = arith.constant 0 : i32
    return %c0_i32, %c0_i32_0 : i32, i32
  }
  func.func @transform_6(%arg0: i32) -> (i32, i32) {
    %c0_i32 = arith.constant 0 : i32
    %c0_i32_0 = arith.constant 0 : i32
    %c0_i32_1 = arith.constant 0 : i32
    return %c0_i32, %c0_i32_0 : i32, i32
  }
  func.func @transform_7(%arg0: i32) -> (i32, i32) {
    %c0_i32 = arith.constant 0 : i32
    %c0_i32_0 = arith.constant 0 : i32
    return %arg0, %c0_i32 : i32, i32
  }
  func.func @transform_8(%arg0: i32) -> (i32, i32) {
    %c0_i32 = arith.constant 0 : i32
    %c0_i32_0 = arith.constant 0 : i32
    return %arg0, %c0_i32 : i32, i32
  }
}

</mosaic_0001>

<bundles_post_ra>
// kernel: tpu_custom_call.1
= control target key start
LH: loop header
LB: loop body
LE: loop exit
PB: predicated region body
PF: predicated region fallthrough
CT: control target
= control target key end

     0   :  { %14 = vsyncpa [#allocation3], 0  ;;  %s1201_s0 = inlined_call_operand.hbm [shape: bf16[8,128], index: 0, kind: input, shape index: {}]   ;;  %s1202_s1 = inlined_call_operand.hbm [shape: bf16[8,384], index: 1, kind: input, shape index: {}]   ;;  %s1203_s2 = inlined_call_operand.hbm [shape: bf16[128,256], index: 2, kind: input, shape index: {}]   ;;  %s1204_s3 = inlined_call_operand.hbm [shape: bf16[256,128], index: 3, kind: input, shape index: {}]   ;;  %s1205_s4 = inlined_call_operand.vmem [shape: f32[1,128], index: 4, kind: input, shape index: {}]   ;;  %s1206_s5 = inlined_call_operand.hbm [shape: bf16[128,256], index: 5, kind: input, shape index: {}]   ;;  %s1207_s6 = inlined_call_operand.vmem [shape: f32[1,256], index: 6, kind: input, shape index: {}]   ;;  %s1208_s7 = inlined_call_operand.hbm [shape: bf16[8,128], index: 7, kind: output, shape index: {0}]   ;;  %s1209_s8 = inlined_call_operand.hbm [shape: bf16[8,384], index: 8, kind: output, shape index: {1}]  }
   0x1   :  { %15 = vsyncpa [#allocation6], 0 }
   0x2   :  { %16 = vsyncpa [#allocation9], 0 }
   0x3   :  { %17 = vsyncpa [#allocation4], 0 }
   0x4   :  { %18 = vsyncpa [#allocation13], 0  ;;  %s1036_s27 = smov [#allocation5]   ;;  %s1037_s29 = smov [#allocation8]  }
   0x5   :  { %s35_s28 = sshll.u32 %s1036_s27, 4  ;;  %s56_s30 = sshll.u32 %s1037_s29, 4  ;;  %s36_s28 = int_to_ptr.vmem [resolvable:$true] %s35_s28  ;;  %s1093_s30 = int_to_ptr.vmem [resolvable:$true] %s56_s30 }
   0x6   :  { %s872_s11 = scalar_lea.hbm %s1202_s1, 192 }
   0x7   :  { %p873_p0 = scmp.ne.s32.totalorder %s1202_s1, %s872_s11  ;;  %p876_p1 = scmp.lt.u32.totalorder %s872_s11, %s1202_s1 }
   0x9   :  { %p878_p2 = pnand %p876_p1, %p873_p0 }
   0xb   :  { %881 = shalt.err (!%p878_p2)
}
   0xc   :  { %s882_s16 = scalar_lea.vmem %s36_s28, 192  ;;  %p887_p4 = scmp.lt.s32.totalorder %s36_s28, %s36_s28 }
   0xd   :  { %p883_p3 = scmp.ne.s32.totalorder %s36_s28, %s882_s16  ;;  %p888_p5 = scmp.lt.s32.totalorder %s882_s16, %s882_s16 }
   0xf   :  { %p889_p6 = por %p888_p5, %p887_p4 }
  0x11   :  { %p890_p7 = pnand %p889_p6, %p883_p3 }
  0x13   :  { %893 = shalt.err (!%p890_p7)
}
  0x14   :  { %38 = dma.hbm_to_vmem [thread:$0]  %s1202_s1, 192, %s36_s28, [#allocation6]  }
  0x15   :  { %s894_s21 = scalar_lea.hbm %s1204_s3, 2048 }
  0x16   :  { %p895_p8 = scmp.ne.s32.totalorder %s1204_s3, %s894_s21  ;;  %p898_p9 = scmp.lt.u32.totalorder %s894_s21, %s1204_s3 }
  0x18   :  { %p900_p10 = pnand %p898_p9, %p895_p8 }
  0x1a   :  { %903 = shalt.err (!%p900_p10)
}
  0x1b   :  { %s904_s26 = scalar_lea.vmem %s1093_s30, 2048  ;;  %p909_p12 = scmp.lt.s32.totalorder %s1093_s30, %s1093_s30 }
  0x1c   :  { %p905_p11 = scmp.ne.s32.totalorder %s1093_s30, %s904_s26  ;;  %p910_p13 = scmp.lt.s32.totalorder %s904_s26, %s904_s26 }
  0x1e   :  { %p911_p0 = por %p910_p13, %p909_p12 }
  0x20   :  { %p912_p1 = pnand %p911_p0, %p905_p11 }
  0x22   :  { %915 = shalt.err (!%p912_p1)
}
  0x23   :  { %s1038_s1 = smov 64   ;;  %s1039_s27 = smov 4  }
  0x24   :  { %62 = dma.hbm_to_vmem [thread:$0]  %s1204_s3, 2048, %s1093_s30, [#allocation9], %s1038_s1, %s1038_s1, %s1039_s27  }
  0x25   :  { %s1040_s9 = smov [#allocation2]   ;;  %s1041_s11 = smov [#allocation7]  }
  0x26   :  { %s25_s10 = sshll.u32 %s1040_s9, 4  ;;  %s44_s12 = sshll.u32 %s1041_s11, 4  ;;  %s26_s10 = int_to_ptr.vmem [resolvable:$true] %s25_s10  ;;  %s1124_s12 = int_to_ptr.vmem [resolvable:$true] %s44_s12 }
  0x27   :  { %s916_s15 = scalar_lea.hbm %s1201_s0, 64 }
  0x28   :  { %p917_p2 = scmp.ne.s32.totalorder %s1201_s0, %s916_s15  ;;  %p920_p3 = scmp.lt.u32.totalorder %s916_s15, %s1201_s0 }
  0x2a   :  { %p922_p4 = pnand %p920_p3, %p917_p2 }
  0x2c   :  { %925 = shalt.err (!%p922_p4)
}
  0x2d   :  { %s926_s3 = scalar_lea.vmem %s26_s10, 64  ;;  %p931_p6 = scmp.lt.s32.totalorder %s26_s10, %s26_s10 }
  0x2e   :  { %p927_p5 = scmp.ne.s32.totalorder %s26_s10, %s926_s3  ;;  %p932_p7 = scmp.lt.s32.totalorder %s926_s3, %s926_s3 }
  0x30   :  { %p933_p8 = por %p932_p7, %p931_p6 }
  0x32   :  { %p934_p9 = pnand %p933_p8, %p927_p5 }
  0x34   :  { %937 = shalt.err (!%p934_p9)
}
  0x35   :  { %28 = dma.hbm_to_vmem [thread:$0]  %s1201_s0, 64, %s26_s10, [#allocation3]  }
  0x36   :  { %s938_s23 = scalar_lea.hbm %s1203_s2, 2048 }
  0x37   :  { %p939_p10 = scmp.ne.s32.totalorder %s1203_s2, %s938_s23  ;;  %p942_p11 = scmp.lt.u32.totalorder %s938_s23, %s1203_s2 }
  0x39   :  { %p944_p12 = pnand %p942_p11, %p939_p10 }
  0x3b   :  { %947 = shalt.err (!%p944_p12)
}
  0x3c   :  { %s948_s27 = scalar_lea.vmem %s1124_s12, 2048  ;;  %p953_p0 = scmp.lt.s32.totalorder %s1124_s12, %s1124_s12 }
  0x3d   :  { %p949_p13 = scmp.ne.s32.totalorder %s1124_s12, %s948_s27  ;;  %p954_p1 = scmp.lt.s32.totalorder %s948_s27, %s948_s27 }
  0x3f   :  { %p955_p2 = por %p954_p1, %p953_p0 }
  0x41   :  { %p956_p3 = pnand %p955_p2, %p949_p13 }
  0x43   :  { %959 = shalt.err (!%p956_p3)
}
  0x44   :  { %s1042_s0 = smov 128   ;;  %s1043_s28 = smov 8  }
  0x45   :  { %50 = dma.hbm_to_vmem [thread:$0]  %s1203_s2, 2048, %s1124_s12, [#allocation6], %s1042_s0, %s1042_s0, %s1043_s28  }
  0x46   :  { %s1044_s10 = smov [#allocation10]   ;;  %s960_s15 = scalar_lea.hbm %s1206_s5, 2048 }
  0x47   :  { %s70_s11 = sshll.u32 %s1044_s10, 4  ;;  %p961_p4 = scmp.ne.s32.totalorder %s1206_s5, %s960_s15  ;;  %s71_s11 = int_to_ptr.vmem [resolvable:$true] %s70_s11 }
  0x48   :  { %p964_p5 = scmp.lt.u32.totalorder %s960_s15, %s1206_s5 }
  0x4a   :  { %p966_p6 = pnand %p964_p5, %p961_p4 }
  0x4c   :  { %969 = shalt.err (!%p966_p6)
}
  0x4d   :  { %s970_s3 = scalar_lea.vmem %s71_s11, 2048  ;;  %p975_p8 = scmp.lt.s32.totalorder %s71_s11, %s71_s11 }
  0x4e   :  { %p971_p7 = scmp.ne.s32.totalorder %s71_s11, %s970_s3  ;;  %p976_p9 = scmp.lt.s32.totalorder %s970_s3, %s970_s3 }
  0x50   :  { %p977_p10 = por %p976_p9, %p975_p8 }
  0x52   :  { %p978_p11 = pnand %p977_p10, %p971_p7 }
  0x54   :  { %981 = shalt.err (!%p978_p11)
}
  0x55   :  { %76 = dma.hbm_to_vmem [thread:$0]  %s1206_s5, 2048, %s71_s11, [#allocation9], %s1042_s0, %s1042_s0, %s1043_s28  }
  0x56   :  { %1026 = dma.done.wait [#allocation3], 64  }
  0x57   :  { %1027 = vsyncadd [#allocation3], 4294967232 }
  0x58   :  { %1028 = dma.done.wait [#allocation6], 2240  }
  0x59   :  { %1029 = vsyncadd [#allocation6], 4294965056 }
  0x5a   :  { %1030 = dma.done.wait [#allocation9], 4096  }
  0x5b   :  { %1031 = vsyncadd [#allocation9], 4294963200  ;;  %v1045_v0 = vmov 0   ;;  %v802_v1 = vld [vmem:[#allocation7 + $0x4] ss:$8 sps:$4 sm:$0xff]   ;;  %v830_v24 = vld [vmem:[#allocation8 + $0x50] sm:$0xff]  }
  0x5c   :  { %224 = vmatprep.mubr.bf16.mxu0 %v1045_v0  ;;  %269 = vmatprep.mubr.bf16.mxu1 %v1045_v0  ;;  %v804_v2 = vld [vmem:[#allocation7] ss:$8 sps:$4 sm:$0xff]   ;;  %v805_v3 = vld [vmem:[#allocation7 + $0x14] ss:$8 sps:$4 sm:$0xff]   ;;  %v807_v4 = vld [vmem:[#allocation7 + $0x10] ss:$8 sps:$4 sm:$0xff]  }
  0x5d   :  { %192 = vmatprep.subr.bf16.mxu0 %v802_v1  ;;  %237 = vmatprep.subr.bf16.mxu1 %v802_v1  ;;  %v808_v5 = vld [vmem:[#allocation7 + $0x24] ss:$8 sps:$4 sm:$0xff]   ;;  %v810_v6 = vld [vmem:[#allocation7 + $0x20] ss:$8 sps:$4 sm:$0xff]   ;;  %v811_v7 = vld [vmem:[#allocation7 + $0x34] ss:$8 sps:$4 sm:$0xff]  }
  0x5e   :  { %193 = vmatpush1.bf16.msra.mxu0 %v804_v2  ;;  %238 = vmatpush1.bf16.msra.mxu1 %v804_v2  ;;  %v813_v8 = vld [vmem:[#allocation7 + $0x30] ss:$8 sps:$4 sm:$0xff]   ;;  %v814_v9 = vld [vmem:[#allocation7 + $0x44] ss:$8 sps:$4 sm:$0xff]   ;;  %v816_v10 = vld [vmem:[#allocation7 + $0x40] ss:$8 sps:$4 sm:$0xff]  }
  0x5f   :  { %194 = vmatprep.subr.bf16.mxu0 %v805_v3  ;;  %239 = vmatprep.subr.bf16.mxu1 %v805_v3  ;;  %v817_v11 = vld [vmem:[#allocation7 + $0x54] ss:$8 sps:$4 sm:$0xff]   ;;  %v819_v12 = vld [vmem:[#allocation7 + $0x50] ss:$8 sps:$4 sm:$0xff]   ;;  %v820_v13 = vld [vmem:[#allocation7 + $0x64] ss:$8 sps:$4 sm:$0xff]  }
  0x60   :  { %v822_v14 = vld [vmem:[#allocation7 + $0x60] ss:$8 sps:$4 sm:$0xff]   ;;  %v823_v15 = vld [vmem:[#allocation7 + $0x74] ss:$8 sps:$4 sm:$0xff]   ;;  %v825_v16 = vld [vmem:[#allocation7 + $0x70] ss:$8 sps:$4 sm:$0xff]  }
  0x61   :  { %v111_v17 = vld [vmem:[#allocation5] sm:$0xf]  ;;  %v236_v18 = vld [vmem:[#allocation5 + $0x4] sm:$0xf]  ;;  %v282_v19 = vld [vmem:[#allocation5 + $0x8] sm:$0xf] }
  0x62   :  { %195 = vmatpush1.bf16.msra.mxu0 %v807_v4  ;;  %240 = vmatpush1.bf16.msra.mxu1 %v807_v4  ;;  %v826_v20 = vld [vmem:[#allocation8 + $0x40] sm:$0xff]   ;;  %v828_v22 = vld [vmem:[#allocation8 + $0x48] sm:$0xff]   ;;  %v831_v25 = vld [vmem:[#allocation8 + $0x10] sm:$0xff]   ;;  %s1047_s23 = smov [#allocation12]  }
  0x63   :  { %196 = vmatprep.subr.bf16.mxu0 %v808_v5  ;;  %241 = vmatprep.subr.bf16.mxu1 %v808_v5  ;;  %v827_v21 = vld [vmem:[#allocation8] sm:$0xff]   ;;  %v829_v23 = vld [vmem:[#allocation8 + $0x8] sm:$0xff]   ;;  %v832_v26 = vld [vmem:[#allocation8 + $0x58] sm:$0xff]  }
  0x64   :  { %v833_v27 = vld [vmem:[#allocation8 + $0x18] sm:$0xff]   ;;  %v834_v28 = vld [vmem:[#allocation8 + $0x60] sm:$0xff]   ;;  %v836_v30 = vld [vmem:[#allocation8 + $0x68] sm:$0xff]  }
  0x65   :  { %v835_v29 = vld [vmem:[#allocation8 + $0x20] sm:$0xff]   ;;  %v837_v31 = vld [vmem:[#allocation8 + $0x28] sm:$0xff]   ;;  %v838_v32 = vld [vmem:[#allocation8 + $0x70] sm:$0xff]  }
  0x66   :  { %197 = vmatpush1.bf16.msra.mxu0 %v810_v6  ;;  %242 = vmatpush1.bf16.msra.mxu1 %v810_v6  ;;  %v839_v33 = vld [vmem:[#allocation8 + $0x30] sm:$0xff]   ;;  %v840_v34 = vld [vmem:[#allocation8 + $0x78] sm:$0xff]   ;;  %v844_v63 = vld [vmem:[#allocation10 + $0x4] ss:$8 sps:$4 sm:$0xff]  }
  0x67   :  { %198 = vmatprep.subr.bf16.mxu0 %v811_v7  ;;  %243 = vmatprep.subr.bf16.mxu1 %v811_v7  ;;  %v841_v35 = vld [vmem:[#allocation8 + $0x38] sm:$0xff]   ;;  %v335_v62 = vld [vmem:[#allocation2] sm:$0xf] }
  0x6a   :  { %199 = vmatpush1.bf16.msra.mxu0 %v813_v8  ;;  %244 = vmatpush1.bf16.msra.mxu1 %v813_v8 }
  0x6b   :  { %200 = vmatprep.subr.bf16.mxu0 %v814_v9  ;;  %245 = vmatprep.subr.bf16.mxu1 %v814_v9 }
  0x6e   :  { %201 = vmatpush1.bf16.msra.mxu0 %v816_v10  ;;  %246 = vmatpush1.bf16.msra.mxu1 %v816_v10 }
  0x6f   :  { %202 = vmatprep.subr.bf16.mxu0 %v817_v11  ;;  %247 = vmatprep.subr.bf16.mxu1 %v817_v11 }
  0x72   :  { %203 = vmatpush1.bf16.msra.mxu0 %v819_v12  ;;  %248 = vmatpush1.bf16.msra.mxu1 %v819_v12 }
  0x73   :  { %204 = vmatprep.subr.bf16.mxu0 %v820_v13  ;;  %249 = vmatprep.subr.bf16.mxu1 %v820_v13 }
  0x76   :  { %205 = vmatpush1.bf16.msra.mxu0 %v822_v14  ;;  %250 = vmatpush1.bf16.msra.mxu1 %v822_v14 }
  0x77   :  { %206 = vmatprep.subr.bf16.mxu0 %v823_v15  ;;  %251 = vmatprep.subr.bf16.mxu1 %v823_v15 }
  0x7a   :  { %207 = vmatpush1.bf16.msra.mxu0 %v825_v16  ;;  %252 = vmatpush1.bf16.msra.mxu1 %v825_v16 }
  0x7b   :  { %283 = vmatprep.subr.bf16.mxu0 %v802_v1  ;;  %768 = vmatprep.subr.bf16.mxu1 %v826_v20  ;;  %v847_v1 = vld [vmem:[#allocation10 + $0x14] ss:$8 sps:$4 sm:$0xff]  }
  0x7d   :  { %225 = vmatmul.mubr.bf16.vlgmr.msra.gmra.mrb[0].mxu0 %v111_v17  ;;  %270 = vmatmul.mubr.bf16.vlgmr.msra.gmra.mrb[0].mxu1 %v236_v18 }
  0x7e   :  { %284 = vmatpush1.bf16.msra.mxu0 %v804_v2  ;;  %315 = vmatprep.mubr.bf16.mxu0 %v1045_v0  ;;  %v845_v2 = vld [vmem:[#allocation10 + $0x10] ss:$8 sps:$4 sm:$0xff]  }
  0x7f   :  { %285 = vmatprep.subr.bf16.mxu0 %v805_v3  ;;  %769 = vmatpush3.bf16.msra.mxu1 %v827_v21  ;;  %v850_v3 = vld [vmem:[#allocation10 + $0x24] ss:$8 sps:$4 sm:$0xff]  }
  0x80   :  { %770 = vmatprep.subr.bf16.mxu1 %v828_v22 }
  0x82   :  { %286 = vmatpush1.bf16.msra.mxu0 %v807_v4  ;;  %v848_v4 = vld [vmem:[#allocation10 + $0x20] ss:$8 sps:$4 sm:$0xff]  }
  0x83   :  { %287 = vmatprep.subr.bf16.mxu0 %v808_v5  ;;  %771 = vmatpush3.bf16.msra.mxu1 %v829_v23  ;;  %v853_v5 = vld [vmem:[#allocation10 + $0x34] ss:$8 sps:$4 sm:$0xff]  }
  0x84   :  { %772 = vmatprep.subr.bf16.mxu1 %v830_v24 }
  0x86   :  { %288 = vmatpush1.bf16.msra.mxu0 %v810_v6  ;;  %v851_v6 = vld [vmem:[#allocation10 + $0x30] ss:$8 sps:$4 sm:$0xff]  }
  0x87   :  { %289 = vmatprep.subr.bf16.mxu0 %v811_v7  ;;  %773 = vmatpush3.bf16.msra.mxu1 %v831_v25  ;;  %v856_v7 = vld [vmem:[#allocation10 + $0x44] ss:$8 sps:$4 sm:$0xff]  }
  0x88   :  { %774 = vmatprep.subr.bf16.mxu1 %v832_v26 }
  0x8a   :  { %290 = vmatpush1.bf16.msra.mxu0 %v813_v8  ;;  %v854_v8 = vld [vmem:[#allocation10 + $0x40] ss:$8 sps:$4 sm:$0xff]  }
  0x8b   :  { %291 = vmatprep.subr.bf16.mxu0 %v814_v9  ;;  %775 = vmatpush3.bf16.msra.mxu1 %v833_v27  ;;  %v859_v9 = vld [vmem:[#allocation10 + $0x54] ss:$8 sps:$4 sm:$0xff]  }
  0x8c   :  { %776 = vmatprep.subr.bf16.mxu1 %v834_v28  ;;  %v538_v28 = vlaneseq }
  0x8e   :  { %292 = vmatpush1.bf16.msra.mxu0 %v816_v10  ;;  %v857_v10 = vld [vmem:[#allocation10 + $0x50] ss:$8 sps:$4 sm:$0xff]  }
  0x8f   :  { %293 = vmatprep.subr.bf16.mxu0 %v817_v11  ;;  %777 = vmatpush3.bf16.msra.mxu1 %v835_v29  ;;  %v862_v11 = vld [vmem:[#allocation10 + $0x64] ss:$8 sps:$4 sm:$0xff]   ;;  %v539_v29 = vshrl.u32 %v538_v28, 7 }
  0x90   :  { %778 = vmatprep.subr.bf16.mxu1 %v836_v30 }
  0x91   :  { %v540_v30 = vsub.s32 0, %v539_v29 }
  0x92   :  { %294 = vmatpush1.bf16.msra.mxu0 %v819_v12  ;;  %v860_v12 = vld [vmem:[#allocation10 + $0x60] ss:$8 sps:$4 sm:$0xff]  }
  0x93   :  { %295 = vmatprep.subr.bf16.mxu0 %v820_v13  ;;  %779 = vmatpush3.bf16.msra.mxu1 %v837_v31  ;;  %v865_v13 = vld [vmem:[#allocation10 + $0x74] ss:$8 sps:$4 sm:$0xff]   ;;  %v536_v31 = vld [vmem:[%s1207_s6] sm:$0x3]  ;;  %s697_s6 = sshll.u32 %s1047_s23, 4  ;;  %s698_s6 = int_to_ptr.vmem [resolvable:$true] %s697_s6 }
  0x94   :  { %780 = vmatprep.subr.bf16.mxu1 %v838_v32  ;;  %v544_v32 = vsub.s32 1, %v539_v29 }
  0x96   :  { %296 = vmatpush1.bf16.msra.mxu0 %v822_v14  ;;  %v863_v14 = vld [vmem:[#allocation10 + $0x70] ss:$8 sps:$4 sm:$0xff]  }
  0x97   :  { %297 = vmatprep.subr.bf16.mxu0 %v823_v15  ;;  %781 = vmatpush3.bf16.msra.mxu1 %v839_v33  ;;  %v541_v33 = vrot.slane %v536_v31, %v540_v30 }
  0x98   :  { %782 = vmatprep.subr.bf16.mxu1 %v840_v34  ;;  %v545_v34 = vrot.slane %v536_v31, %v544_v32 }
  0x9a   :  { %298 = vmatpush1.bf16.msra.mxu0 %v825_v16  ;;  %v728_v16 = vld [vmem:[%s1205_s4] ss:$0 sm:$0xff]  ;;  %s1046_s4 = smov [#allocation11]  }
  0x9b   :  { %783 = vmatpush3.bf16.msra.mxu1 %v841_v35  ;;  %628 = vmatprep.subr.bf16.mxu0 %v844_v63  ;;  %s687_s22 = sshll.u32 %s1046_s4, 4  ;;  %s688_s22 = int_to_ptr.vmem [resolvable:$true] %s687_s22 }
  0x9c   :  { %s982_s24 = scalar_lea.vmem %s688_s22, 64  ;;  %p987_p13 = scmp.lt.s32.totalorder %s688_s22, %s688_s22 }
  0x9d   :  { %316 = vmatmul.mubr.bf16.vlgmr.msra.gmra.mrb[4].mxu0 %v282_v19  ;;  %p983_p12 = scmp.ne.s32.totalorder %s688_s22, %s982_s24  ;;  %p988_p0 = scmp.lt.s32.totalorder %s982_s24, %s982_s24 }
  0x9e   :  { %660 = vmatprep.mubr.bf16.mxu0 %v1045_v0  ;;  %v842_v0 = vld [vmem:[#allocation10] ss:$8 sps:$4 sm:$0xff]  }
  0x9f   :  { %629 = vmatpush1.bf16.msra.mxu0 %v842_v0  ;;  %p989_p1 = por %p988_p0, %p987_p13 }
  0xa0   :  { %630 = vmatprep.subr.bf16.mxu0 %v847_v1 }
  0xa1   :  { %p990_p2 = pnand %p989_p1, %p983_p12 }
  0xa3   :  { %631 = vmatpush1.bf16.msra.mxu0 %v845_v2 }
  0xa4   :  { %632 = vmatprep.subr.bf16.mxu0 %v850_v3 }
  0xa7   :  { %633 = vmatpush1.bf16.msra.mxu0 %v848_v4 }
  0xa8   :  { %634 = vmatprep.subr.bf16.mxu0 %v853_v5 }
  0xab   :  { %635 = vmatpush1.bf16.msra.mxu0 %v851_v6 }
  0xac   :  { %636 = vmatprep.subr.bf16.mxu0 %v856_v7 }
  0xaf   :  { %637 = vmatpush1.bf16.msra.mxu0 %v854_v8 }
  0xb0   :  { %638 = vmatprep.subr.bf16.mxu0 %v859_v9 }
  0xb3   :  { %639 = vmatpush1.bf16.msra.mxu0 %v857_v10 }
  0xb4   :  { %640 = vmatprep.subr.bf16.mxu0 %v862_v11 }
  0xb7   :  { %641 = vmatpush1.bf16.msra.mxu0 %v860_v12 }
  0xb8   :  { %642 = vmatprep.subr.bf16.mxu0 %v865_v13 }
  0xbb   :  { %643 = vmatpush1.bf16.msra.mxu0 %v863_v14 }
 0x150   :  { %v226_v36 = vpop.f32.mrb[0].mxu0  ;;  %v271_v37 = vpop.f32.mrb[0].mxu1 }
 0x151   :  { %v235_v38 = vmul.f32 %v226_v36, %v226_v36  ;;  %v228_v39 = vpop.f32.mrb[1].mxu0  ;;  %v280_v40 = vmul.f32 %v271_v37, %v271_v37  ;;  %v273_v41 = vpop.f32.mrb[1].mxu1 }
 0x152   :  { %v233_v42 = vpack.c.bf16 %v228_v39, %v228_v39  ;;  %v230_v43 = vpop.f32.mrb[2].mxu0  ;;  %v278_v44 = vpack.c.bf16 %v273_v41, %v273_v41  ;;  %v275_v45 = vpop.f32.mrb[2].mxu1 }
 0x153   :  { %v281_v46 = vadd.f32 %v280_v40, %v235_v38  ;;  %v231_v47 = vpop.f32.mrb[3].mxu0  ;;  %v276_v48 = vpop.f32.mrb[3].mxu1 }
 0x154   :  { %234 = vst [vmem:[#allocation12] sm:$0xf] %v233_v42  ;;  %279 = vst [vmem:[#allocation12 + $0x4] sm:$0xf] %v278_v44 }
 0x15b   :  { %v672_v43 = vld [vmem:[#allocation12] sm:$0xf]  ;;  %v675_v44 = vld [vmem:[#allocation12 + $0x4] sm:$0xf] }
 0x170   :  { %v317_v49 = vpop.f32.mrb[4].mxu0 }
 0x171   :  { %v326_v50 = vmul.f32 %v317_v49, %v317_v49  ;;  %v319_v51 = vpop.f32.mrb[5].mxu0 }
 0x172   :  { %v324_v52 = vpack.c.bf16 %v319_v51, %v319_v51  ;;  %v321_v53 = vpop.f32.mrb[6].mxu0 }
 0x173   :  { %v327_v54 = vadd.f32 %v326_v50, %v281_v46  ;;  %v322_v55 = vpop.f32.mrb[7].mxu0 }
 0x174   :  { %325 = vst [vmem:[#allocation12 + $0x8] sm:$0xf] %v324_v52 }
 0x175   :  { %866 = vrsqrt.f32 %v327_v54  ;;  %vm330_vm0 = vcmp.eq.f32.partialorder %v327_v54, inf  ;;  %v333_v58 = vand.u32 2147483648, %v327_v54  ;;  %vm332_vm1 = vcmp.eq.f32.partialorder %v327_v54, 0.0 }
 0x17b   :  { %v678_v45 = vld [vmem:[#allocation12 + $0x8] sm:$0xf] }
 0x17f   :  { %v867_v56 = vpop.eup %866 }
 0x180   :  { %v329_v57 = vmul.f32 %v867_v56, %v327_v54 }
 0x182   :  { %v331_v59 = vsel %vm330_vm0, %v327_v54, %v329_v57 }
 0x183   :  { %v334_v60 = vsel %vm332_vm1, %v333_v58, %v331_v59 }
 0x184   :  { %v336_v61 = vpack.c.bf16 %v334_v60, %v334_v60 }
 0x186   :  { %504 = vmatprep.mubr.bf16.mxu1 %v336_v61 }
 0x187   :  { %505 = vmatmul.mubr.bf16.vlgmr.msra.gmra.mrb[4].mxu1 %v335_v62 }
 0x25a   :  { %v784_v15 = vpop.f32.mrb[4].mxu1 }
 0x25b   :  { %v785_v17 = vpop.f32.mrb[5].mxu1 }
 0x25c   :  { %v786_v18 = vadd.f32 %v785_v17, %v784_v15  ;;  %v787_v19 = vpop.f32.mrb[6].mxu1 }
 0x25d   :  { %v788_v20 = vpop.f32.mrb[7].mxu1 }
 0x25e   :  { %v507_v21 = vadd.f32 %v786_v18, %v728_v16 }
 0x260   :  { %v745_v22 = vmul.f32 -1.442695, %v507_v21 }
 0x262   :  { %868 = vpow2.f32 %v745_v22 }
 0x26c   :  { %v869_v23 = vpop.eup %868 }
 0x26d   :  { %v515_v24 = vadd.f32 1.0, %v869_v23 }
 0x26f   :  { %870 = vrcp.f32 %v515_v24 }
 0x279   :  { %v871_v25 = vpop.eup %870 }
 0x27a   :  { %v518_v26 = vmul.f32 %v871_v25, %v507_v21 }
 0x27c   :  { %v519_v27 = vpack.c.bf16 %v518_v26, %v518_v26 }
 0x27e   :  { %661 = vmatmul.mubr.bf16.vlgmr.msra.gmra.mrb[8].mxu0 %v519_v27 }
 0x351   :  { %v662_v35 = vpop.f32.mrb[8].mxu0 }
 0x352   :  { %v663_v36 = vadd.f32 %v662_v35, %v541_v33  ;;  %v664_v37 = vpop.f32.mrb[9].mxu0 }
 0x353   :  { %v665_v38 = vadd.f32 %v664_v37, %v545_v34  ;;  %v666_v39 = vpop.f32.mrb[10].mxu0 }
 0x354   :  { %v669_v40 = vpack.c.bf16 %v663_v36, %v663_v36  ;;  %v667_v41 = vpop.f32.mrb[11].mxu0 }
 0x355   :  { %v671_v42 = vpack.c.bf16 %v665_v38, %v665_v38 }
 0x356   :  { %670 = vst [vmem:[#allocation11] sm:$0xf] %v669_v40 }
 0x357   :  { %v673_v46 = vmul.bf16 %v672_v43, %v671_v42  ;;  %v676_v47 = vmul.bf16 %v675_v44, %v671_v42  ;;  %v679_v48 = vmul.bf16 %v678_v45, %v671_v42 }
 0x358   :  { %993 = shalt.err (!%p990_p2)
}
 0x359   :  { %s994_s1 = scalar_lea.hbm %s1208_s7, 64 }
 0x35a   :  { %p995_p3 = scmp.ne.s32.totalorder %s1208_s7, %s994_s1  ;;  %p998_p4 = scmp.lt.u32.totalorder %s994_s1, %s1208_s7 }
 0x35c   :  { %p1000_p5 = pnand %p998_p4, %p995_p3 }
 0x35e   :  { %1003 = shalt.err (!%p1000_p5)
}
 0x35f   :  { %690 = dma.vmem_to_hbm [thread:$0]  %s688_s22, 64, %s1208_s7, [#allocation4]   ;;  %v767_v49 = vcombine.low %v673_v46, %v676_v47  ;;  %680 = vst [vmem:[#allocation12 + $0x8] sm:$0xf] %v679_v48 }
 0x360   :  { %s1004_s11 = scalar_lea.vmem %s698_s6, 192  ;;  %p1009_p7 = scmp.lt.s32.totalorder %s698_s6, %s698_s6 }
 0x361   :  { %766 = vst [vmem:[#allocation12] sm:$0xff] %v767_v49   ;;  %p1005_p6 = scmp.ne.s32.totalorder %s698_s6, %s1004_s11  ;;  %p1010_p8 = scmp.lt.s32.totalorder %s1004_s11, %s1004_s11 }
 0x363   :  { %p1011_p9 = por %p1010_p8, %p1009_p7 }
 0x365   :  { %p1012_p10 = pnand %p1011_p9, %p1005_p6 }
 0x367   :  { %1015 = shalt.err (!%p1012_p10)
}
 0x368   :  { %s1016_s15 = scalar_lea.hbm %s1209_s8, 192 }
 0x369   :  { %p1017_p11 = scmp.ne.s32.totalorder %s1209_s8, %s1016_s15  ;;  %p1020_p12 = scmp.lt.u32.totalorder %s1016_s15, %s1209_s8 }
 0x36b   :  { %p1022_p13 = pnand %p1020_p12, %p1017_p11 }
 0x36d   :  { %1025 = shalt.err (!%p1022_p13)
}
 0x36e   :  { %700 = dma.vmem_to_hbm [thread:$0]  %s698_s6, 192, %s1209_s8, [#allocation13]  }
 0x36f   :  { %1032 = dma.done.wait [#allocation4], 64  }
 0x370   :  { %1033 = vsyncadd [#allocation4], 4294967232 }
 0x371   :  { %1034 = dma.done.wait [#allocation13], 192  }
 0x372   :  { %1035 = vsyncadd [#allocation13], 4294967104 }
 0x373   :  { %707 = vsyncpa [#allocation3], 1 }
 0x374   :  { %708 = vsyncpa [#allocation6], 1 }
 0x375   :  { %709 = vsyncpa [#allocation9], 1 }
 0x376   :  { %710 = vsyncpa [#allocation4], 1 }
 0x377   :  { %711 = vsyncpa [#allocation13], 1 }

</bundles_post_ra>
